<compile_context>
chip_gen: v7x
topology: tpu7x:2x2x1
jax: 0.10.0
libtpu: 0.0.40
codegen_flags: <defaults>
</compile_context>

<pallas_src>
import jax
import jax.numpy as jnp
from jax import lax
from jax.experimental import pallas as pl
from jax.experimental.pallas import tpu as pltpu


def _ce_kernel(x_ref, w_ref, b_ref, y_ref, o_ref, acc_ref):
    """One batch tile: accumulate sum of per-example CE losses into SMEM.

    Grid = (num_cores [parallel], nb_per_core [arbitrary reduction]).
    Output block is the per-core partial sum; the wrapper divides by B.
    """
    i = pl.program_id(1)

    @pl.when(i == 0)
    def _init():
        acc_ref[0, 0] = 0.0

    x = x_ref[...]                        # (TB, H)   input dtype (MXU native)
    w = w_ref[...]                        # (H_out, H_in) torch layout
    b = b_ref[...].astype(jnp.float32)    # (1, H)

    # x @ W.T without a materialized wrapper transpose: contract axis 1 of x
    # with axis 1 of W; MXU accumulates in f32.
    logits = lax.dot_general(
        x, w,
        dimension_numbers=(((1,), (1,)), ((), ())),
        preferred_element_type=jnp.float32,
    ) + b                                                         # (TB, H) f32

    # Numerically stable CE using one shifted tile.
    m = jnp.max(logits, axis=-1, keepdims=True)                   # (TB, 1)
    shifted = logits - m                                          # (TB, H)
    sum_exp = jnp.sum(jnp.exp(shifted), axis=-1, keepdims=True)   # (TB, 1)

    # True-class shifted logit via masked select (no dynamic gather on TPU).
    classes = lax.broadcasted_iota(jnp.int32, shifted.shape, 1)   # (TB, H)
    true_shifted = jnp.sum(
        jnp.where(classes == y_ref[...], shifted, 0.0),
        axis=-1, keepdims=True)                                   # (TB, 1)

    # per-row loss = log(sum_exp) - true_shifted   (the max term cancels)
    acc_ref[0, 0] += jnp.sum(jnp.log(sum_exp) - true_shifted)

    @pl.when(i == pl.num_programs(1) - 1)
    def _finalize():
        o_ref[0, 0] = acc_ref[0, 0]


def pld_simple_model_forward(x, w, b, y, *, block_b=256, num_cores=1,
                             cast_to_bf16=False):
    """x: (B, H), w: (H, H) torch layout [out, in], b: (H,), y: (B,) labels.

    num_cores > 1 (v7x) splits the batch over a leading 'parallel' grid axis;
    requires B % (tb * num_cores) == 0.
    cast_to_bf16=True feeds the MXU in bf16 (numerics-visible; softmax stays f32).
    """
    B, H = x.shape
    tb = min(B, block_b)
    assert B % tb == 0, "batch must be divisible by the batch tile"
    nt = B // tb
    assert nt % num_cores == 0, "tile count must be divisible by num_cores"
    nb_per_core = nt // num_cores

    if cast_to_bf16:
        x = x.astype(jnp.bfloat16)
        w = w.astype(jnp.bfloat16)

    b2 = b.reshape(1, H)
    y2 = y.astype(jnp.int32).reshape(B, 1)

    # Explicit VMEM budget: resident W + bias (single-buffered) +
    # double-buffered x/y tiles + 25% headroom, clamped to sane bounds.
    w_bytes = H * H * w.dtype.itemsize
    b_bytes = H * b2.dtype.itemsize
    x_bytes = 2 * tb * H * x.dtype.itemsize
    y_bytes = 2 * tb * y2.dtype.itemsize
    vmem_limit = int(1.25 * (w_bytes + b_bytes + x_bytes + y_bytes))
    vmem_limit = max(vmem_limit, 4 << 20)
    vmem_limit = min(vmem_limit, 64 << 20)

    partial = pl.pallas_call(
        _ce_kernel,
        out_shape=jax.ShapeDtypeStruct((num_cores, 1), jnp.float32),
        grid=(num_cores, nb_per_core),
        in_specs=[
            # x: batch-tiled, double-buffered (default) behind the MXU.
            pl.BlockSpec((tb, H), lambda c, i: (c * nb_per_core + i, 0)),
            # W: resident across the whole grid -> single buffer.
            pl.BlockSpec((H, H), lambda c, i: (0, 0),
                         pipeline_mode=pl.Buffered(1)),
            # bias: resident -> single buffer.
            pl.BlockSpec((1, H), lambda c, i: (0, 0),
                         pipeline_mode=pl.Buffered(1)),
            # labels: batch-tiled.
            pl.BlockSpec((tb, 1), lambda c, i: (c * nb_per_core + i, 0)),
        ],
        out_specs=pl.BlockSpec((1, 1), lambda c, i: (c, 0),
                               memory_space=pltpu.SMEM),
        scratch_shapes=[pltpu.SMEM((1, 1), jnp.float32)],
        compiler_params=pltpu.CompilerParams(
            dimension_semantics=("parallel", "arbitrary"),
            vmem_limit_bytes=vmem_limit),
    )(x, w, b2, y2)

    # Final mean over the batch (sum of per-core partial sums / B).
    return jnp.sum(partial) / jnp.float32(B)


if __name__ == "__main__":
    # Small shapes consistent with the module: batch=8, hidden_dim=32.
    B, H = 8, 32
    key = jax.random.PRNGKey(0)
    kx, kw, kb, ky = jax.random.split(key, 4)

    # Deterministic init (torch Linear uses U(-1/sqrt(H), 1/sqrt(H))).
    bound = 1.0 / jnp.sqrt(jnp.float32(H))
    w = jax.random.uniform(kw, (H, H), jnp.float32, -bound, bound)   # [out, in]
    b = jax.random.uniform(kb, (H,), jnp.float32, -bound, bound)

    x = jax.random.normal(kx, (B, H), jnp.float32)
    y = jax.random.randint(ky, (B,), 0, H, jnp.int32)

    loss = pld_simple_model_forward(x, w, b, y)
    jax.block_until_ready(loss)

    # Reference check in plain JAX (same math, outside the kernel).
    logits_ref = x @ w.T + b
    lse_ref = jax.nn.logsumexp(logits_ref, axis=-1)
    ref = jnp.mean(lse_ref - logits_ref[jnp.arange(B), y])
    assert jnp.allclose(loss, ref, rtol=1e-5, atol=1e-5), (loss, ref)

    print("KERNEL_OK")
</pallas_src>

<mosaic_0001>
module attributes {stable_mosaic.version = 11 : i64} {
  func.func @_ce_kernel(%arg0: i32, %arg1: i32, %arg2: memref<8x32xf32, #tpu.memory_space<vmem>>, %arg3: memref<32x32xf32, #tpu.memory_space<vmem>>, %arg4: memref<1x32xf32, #tpu.memory_space<vmem>>, %arg5: memref<8x1xi32, #tpu.memory_space<vmem>>, %arg6: memref<1x1xf32, #tpu.memory_space<smem>>, %arg7: memref<1x1xf32, #tpu.memory_space<smem>>) attributes {dimension_semantics = [#tpu.dimension_semantics<parallel>, #tpu.dimension_semantics<arbitrary>], iteration_bounds = array<i64: 1, 1>, scalar_prefetch = 0 : i64, scratch_operands = 1 : i64, tpu.core_type = #tpu.core_type<tc>, window_params = [{transform_indices = @transform_0, window_bounds = array<i64: 8, 32>}, {pipeline_mode = #tpu.pipeline_mode<synchronous>, transform_indices = @transform_1, window_bounds = array<i64: 32, 32>}, {pipeline_mode = #tpu.pipeline_mode<synchronous>, transform_indices = @transform_2, window_bounds = array<i64: 1, 32>}, {transform_indices = @transform_3, window_bounds = array<i64: 8, 1>}, {transform_indices = @transform_4, window_bounds = array<i64: 1, 1>}]} {
    %c0_i32 = arith.constant 0 : i32
    %0 = arith.cmpi eq, %arg1, %c0_i32 : i32
    %1 = arith.extui %0 : i1 to i32
    %c0_i32_0 = arith.constant 0 : i32
    %2 = arith.cmpi ne, %1, %c0_i32_0 : i32
    scf.if %2 {
      %cst_19 = arith.constant 0.000000e+00 : f32
      %c0_20 = arith.constant 0 : index
      %c0_21 = arith.constant 0 : index
      %36 = memref.load %arg7[%c0_20, %c0_21] : memref<1x1xf32, #tpu.memory_space<smem>>
      memref.store %cst_19, %arg7[%c0_20, %c0_21] : memref<1x1xf32, #tpu.memory_space<smem>>
    } else {
    }
    %c0 = arith.constant 0 : index
    %c0_1 = arith.constant 0 : index
    %3 = vector.load %arg2[%c0, %c0_1] : memref<8x32xf32, #tpu.memory_space<vmem>>, vector<8x32xf32>
    %c0_2 = arith.constant 0 : index
    %c0_3 = arith.constant 0 : index
    %4 = vector.load %arg3[%c0_2, %c0_3] : memref<32x32xf32, #tpu.memory_space<vmem>>, vector<32x32xf32>
    %c0_4 = arith.constant 0 : index
    %c0_5 = arith.constant 0 : index
    %5 = vector.load %arg4[%c0_4, %c0_5] : memref<1x32xf32, #tpu.memory_space<vmem>>, vector<1x32xf32>
    %cst = arith.constant dense<0.000000e+00> : vector<8x32xf32>
    %6 = tpu.matmul %3, %4, %cst {dimension_numbers = #tpu.dot_dimension_numbers<[1], [1], [0], [0], [0, 0, 1, 0], [], []>} : vector<8x32xf32>, vector<32x32xf32>, vector<8x32xf32> -> vector<8x32xf32>
    %7 = vector.broadcast %5 : vector<1x32xf32> to vector<8x32xf32>
    %8 = arith.addf %6, %7 : vector<8x32xf32>
    %cst_6 = arith.constant dense<0xFF800000> : vector<8xf32>
    %9 = vector.multi_reduction <maximumf>, %8, %cst_6 [1] : vector<8x32xf32> to vector<8xf32>
    %10 = vector.shape_cast %9 : vector<8xf32> to vector<8x1xf32>
    %11 = vector.broadcast %10 : vector<8x1xf32> to vector<8x32xf32>
    %12 = arith.subf %8, %11 : vector<8x32xf32>
    %13 = math.exp %12 : vector<8x32xf32>
    %cst_7 = arith.constant dense<0.000000e+00> : vector<8xf32>
    %14 = vector.multi_reduction <add>, %13, %cst_7 [1] : vector<8x32xf32> to vector<8xf32>
    %15 = vector.shape_cast %14 : vector<8xf32> to vector<8x1xf32>
    %16 = tpu.iota {dimensions = array<i32: 1>} : vector<8x32xi32>
    %c0_8 = arith.constant 0 : index
    %c0_9 = arith.constant 0 : index
    %17 = vector.load %arg5[%c0_8, %c0_9] : memref<8x1xi32, #tpu.memory_space<vmem>>, vector<8x1xi32>
    %18 = vector.broadcast %17 : vector<8x1xi32> to vector<8x32xi32>
    %19 = arith.cmpi eq, %16, %18 : vector<8x32xi32>
    %cst_10 = arith.constant 0.000000e+00 : f32
    %20 = vector.broadcast %cst_10 : f32 to vector<8x32xf32>
    %21 = arith.select %19, %12, %20 : vector<8x32xi1>, vector<8x32xf32>
    %cst_11 = arith.constant dense<0.000000e+00> : vector<8xf32>
    %22 = vector.multi_reduction <add>, %21, %cst_11 [1] : vector<8x32xf32> to vector<8xf32>
    %23 = vector.shape_cast %22 : vector<8xf32> to vector<8x1xf32>
    %c0_12 = arith.constant 0 : index
    %c0_13 = arith.constant 0 : index
    %24 = memref.load %arg7[%c0_12, %c0_13] : memref<1x1xf32, #tpu.memory_space<smem>>
    %25 = math.log %15 : vector<8x1xf32>
    %26 = arith.subf %25, %23 : vector<8x1xf32>
    %27 = vector.shape_cast %26 : vector<8x1xf32> to vector<1x8x1xf32>
    %cst_14 = arith.constant dense<0.000000e+00> : vector<1xf32>
    %28 = vector.multi_reduction <add>, %27, %cst_14 [1, 2] : vector<1x8x1xf32> to vector<1xf32>
    %29 = vector.shape_cast %28 : vector<1xf32> to vector<1x1x1xf32>
    %30 = vector.extract %29[0, 0, 0] : f32 from vector<1x1x1xf32>
    %31 = arith.addf %24, %30 : f32
    %c0_15 = arith.constant 0 : index
    %c0_16 = arith.constant 0 : index
    %32 = memref.load %arg7[%c0_15, %c0_16] : memref<1x1xf32, #tpu.memory_space<smem>>
    memref.store %31, %arg7[%c0_15, %c0_16] : memref<1x1xf32, #tpu.memory_space<smem>>
    %c0_i32_17 = arith.constant 0 : i32
    %33 = arith.cmpi eq, %arg1, %c0_i32_17 : i32
    %34 = arith.extui %33 : i1 to i32
    %c0_i32_18 = arith.constant 0 : i32
    %35 = arith.cmpi ne, %34, %c0_i32_18 : i32
    scf.if %35 {
      %c0_19 = arith.constant 0 : index
      %c0_20 = arith.constant 0 : index
      %36 = memref.load %arg7[%c0_19, %c0_20] : memref<1x1xf32, #tpu.memory_space<smem>>
      %c0_21 = arith.constant 0 : index
      %c0_22 = arith.constant 0 : index
      %37 = memref.load %arg6[%c0_21, %c0_22] : memref<1x1xf32, #tpu.memory_space<smem>>
      memref.store %36, %arg6[%c0_21, %c0_22] : memref<1x1xf32, #tpu.memory_space<smem>>
    } else {
    }
    return
  }
  func.func @transform_0(%arg0: i32, %arg1: i32) -> (i32, i32) {
    %c1_i32 = arith.constant 1 : i32
    %0 = arith.muli %arg0, %c1_i32 : i32
    %1 = arith.addi %0, %arg1 : i32
    %c0_i32 = arith.constant 0 : i32
    %c0_i32_0 = arith.constant 0 : i32
    return %1, %c0_i32 : i32, i32
  }
  func.func @transform_1(%arg0: i32, %arg1: i32) -> (i32, i32) {
    %c0_i32 = arith.constant 0 : i32
    %c0_i32_0 = arith.constant 0 : i32
    %c0_i32_1 = arith.constant 0 : i32
    return %c0_i32, %c0_i32_0 : i32, i32
  }
  func.func @transform_2(%arg0: i32, %arg1: i32) -> (i32, i32) {
    %c0_i32 = arith.constant 0 : i32
    %c0_i32_0 = arith.constant 0 : i32
    %c0_i32_1 = arith.constant 0 : i32
    return %c0_i32, %c0_i32_0 : i32, i32
  }
  func.func @transform_3(%arg0: i32, %arg1: i32) -> (i32, i32) {
    %c1_i32 = arith.constant 1 : i32
    %0 = arith.muli %arg0, %c1_i32 : i32
    %1 = arith.addi %0, %arg1 : i32
    %c0_i32 = arith.constant 0 : i32
    %c0_i32_0 = arith.constant 0 : i32
    return %1, %c0_i32 : i32, i32
  }
  func.func @transform_4(%arg0: i32, %arg1: i32) -> (i32, i32) {
    %c0_i32 = arith.constant 0 : i32
    %c0_i32_0 = arith.constant 0 : i32
    return %arg0, %c0_i32 : i32, i32
  }
}

</mosaic_0001>

<bundles_post_ra>
// kernel: tpu_custom_call.1
= control target key start
LH: loop header
LB: loop body
LE: loop exit
PB: predicated region body
PF: predicated region fallthrough
CT: control target
= control target key end

     0   :  { %9 = vsyncpa [#allocation4], 0  ;;  %s393_s0 = inlined_call_operand.vmem [shape: f32[8,32], index: 0, kind: input, shape index: {}]   ;;  %s394_s1 = inlined_call_operand.hbm [shape: f32[32,32], index: 1, kind: input, shape index: {}]   ;;  %s395_s2 = inlined_call_operand.vmem [shape: f32[1,32], index: 2, kind: input, shape index: {}]   ;;  %s396_s3 = inlined_call_operand.vmem [shape: s32[8,1], index: 3, kind: input, shape index: {}]   ;;  %s397_s4 = inlined_call_operand.hbm [shape: f32[1,1], index: 4, kind: output, shape index: {}]  }
   0x1   :  { %10 = vsyncpa [#allocation5], 0  ;;  %s321_s15 = smov [#allocation3]   ;;  %s285_s19 = scalar_lea.hbm %s394_s1, 512 }
   0x2   :  { %s24_s16 = sshll.u32 %s321_s15, 4  ;;  %p286_p0 = scmp.ne.s32.totalorder %s394_s1, %s285_s19  ;;  %s25_s16 = int_to_ptr.vmem [resolvable:$true] %s24_s16 }
   0x3   :  { %p289_p1 = scmp.lt.u32.totalorder %s285_s19, %s394_s1 }
   0x5   :  { %p291_p2 = pnand %p289_p1, %p286_p0 }
   0x7   :  { %294 = shalt.err (!%p291_p2)
}
   0x8   :  { %s295_s24 = scalar_lea.vmem %s25_s16, 512  ;;  %p300_p4 = scmp.lt.s32.totalorder %s25_s16, %s25_s16 }
   0x9   :  { %p296_p3 = scmp.ne.s32.totalorder %s25_s16, %s295_s24  ;;  %p301_p5 = scmp.lt.s32.totalorder %s295_s24, %s295_s24 }
   0xb   :  { %p302_p6 = por %p301_p5, %p300_p4 }
   0xd   :  { %p303_p7 = pnand %p302_p6, %p296_p3 }
   0xf   :  { %306 = shalt.err (!%p303_p7)
}
  0x10   :  { %s322_s25 = smov 128   ;;  %s323_s26 = smov 8  }
  0x11   :  { %30 = dma.hbm_to_vmem [thread:$0]  %s394_s1, 512, %s25_s16, [#allocation4], %s322_s25, %s322_s25, %s323_s26  }
  0x12   :  { %317 = dma.done.wait [#allocation4], 512  }
  0x13   :  { %318 = vsyncadd [#allocation4], 4294966784  ;;  %v324_v0 = vmov 0.0|0.0   ;;  %vm325_vm0 = vmmov 0   ;;  %v326_v1 = vmov 0.0   ;;  %vm84_vm1 = vcmask 261120  }
  0x14   :  { %262 = vmatprep.subr.bf16.mxu0 %v324_v0  ;;  %259 = vmatprep.mubr.msk.f32.mxu0 %vm325_vm0, %v326_v1  ;;  %v73_v2 = vld [vmem:[#allocation3] sm:$0xff]  ;;  %v74_v3 = vld [vmem:[#allocation3 + $0x8] sm:$0xff]  ;;  %vm264_vm2 = vmpackc.low %vm84_vm1, %vm84_vm1  ;;  %v327_v9 = vmov 0   ;;  %v179_v19 = vlaneseq  ;;  %vm194_vm4 = vcmask 7168   ;;  %s307_s8 = scalar_lea.hbm %s397_s4, 16 }
  0x15   :  { %v263_v4 = vpack.c.bf16 %v74_v3, %v73_v2  ;;  %v75_v5 = vld [vmem:[#allocation3 + $0x10] sm:$0xff]  ;;  %v76_v6 = vld [vmem:[#allocation3 + $0x18] sm:$0xff]  ;;  %v72_v8 = vld [vmem:[%s393_s0] sm:$0xff]  ;;  %280 = vset.pattern.permute.xlu0 %v327_v9  ;;  %p308_p8 = scmp.ne.s32.totalorder %s397_s4, %s307_s8  ;;  %p311_p9 = scmp.lt.u32.totalorder %s307_s8, %s397_s4 }
  0x16   :  { %v267_v7 = vpack.c.bf16 %v76_v6, %v75_v5  ;;  %v240_v10 = vld [vmem:[%s395_s2] ss:$0 sm:$0xff]  ;;  %v180_v20 = vand.u32 127, %v179_v19 }
  0x17   :  { %265 = vmatpush3.bf16.xpose.msk.msra.mxu0 %vm264_vm2, %v263_v4  ;;  %v181_v15 = vld [vmem:[%s396_s3] sm:$0xff]  ;;  %p313_p10 = pnand %p311_p9, %p308_p8 }
  0x18   :  { %266 = vmatprep.subr.bf16.mxu0 %v324_v0 }
  0x1f   :  { %269 = vmatpush3.bf16.xpose.msk.msra.mxu0 %vm264_vm2, %v267_v7 }
  0x26   :  { %260 = vmatmul.mubr.msk.f32.vlgmr.msra.gmra.mrb[0].mxu0 %vm84_vm1, %v72_v8 }
  0xf9   :  { %v166_v11 = vpop.f32.mrb[0].mxu0 }
  0xfa   :  { %v167_v12 = vadd.f32 %v240_v10, %v166_v11  ;;  %v261_v13 = vpop.f32.mrb[1].mxu0 }
  0xfc   :  { %v170_v14 = vsel %vm84_vm1, %v167_v12, -inf }
  0xfd   :  { %171 = vmax.xlane.f32.xlu0 %v170_v14 }
 0x113   :  { %183 = vperm.xlu0 %280, %v181_v15  }
 0x18a   :  { %v172_v16 = vpop.xlane.xlu0 %171 }
 0x18b   :  { %v173_v17 = vsub.f32 %v167_v12, %v172_v16 }
 0x18d   :  { %v174_v18 = vmul.f32 1.442695, %v173_v17 }
 0x18f   :  { %281 = vpow2.f32 %v174_v18 }
 0x192   :  { %v184_v21 = vpop.permute.xlu0 %183 }
 0x193   :  { %vm185_vm3 = vcmp.eq.s32.totalorder %v180_v20, %v184_v21 }
 0x194   :  { %v186_v24 = vsel %vm185_vm3, %v173_v17, 0.0 }
 0x195   :  { %v187_v25 = vsel %vm84_vm1, %v186_v24, 0.0 }
 0x199   :  { %v282_v22 = vpop.eup %281 }
 0x19a   :  { %v176_v23 = vsel %vm84_vm1, %v282_v22, 0.0 }
 0x19b   :  { %177 = vadd.xlane.f32.xlu1 %v176_v23 }
 0x19f   :  { %188 = vadd.xlane.f32.xlu1 %v187_v25 }
 0x228   :  { %v178_v26 = vpop.xlane.xlu1 %177 }
 0x229   :  { %283 = vlog2.f32 %v178_v26 }
 0x22c   :  { %v189_v29 = vpop.xlane.xlu1 %188 }
 0x233   :  { %v284_v27 = vpop.eup %283 }
 0x234   :  { %v192_v28 = vmul.f32 0.6931472, %v284_v27 }
 0x236   :  { %v193_v30 = vsub.f32 %v192_v28, %v189_v29 }
 0x238   :  { %v195_v31 = vsel %vm194_vm4, %v193_v30, 0.0 }
 0x239   :  { %196 = vadd.xlane.f32.xlu1 %v195_v31 }
 0x2c6   :  { %v197_v32 = vpop.xlane.xlu1 %196 }
 0x2c7   :  { %v198_v33 = vrot.slane %v197_v32, 4 }
 0x2c9   :  { %v199_v34 = vadd.f32 %v198_v33, %v197_v32 }
 0x2cb   :  { %v200_v35 = vrot.slane %v199_v34, 2 }
 0x2cd   :  { %v201_v36 = vadd.f32 %v200_v35, %v199_v34 }
 0x2cf   :  { %v202_v37 = vrot.slane %v201_v36, 1 }
 0x2d1   :  { %v203_v38 = vadd.f32 %v202_v37, %v201_v36 }
 0x2d3   :  { %270 = vpush %v203_v38 }
 0x304   :  { %s271_s0 = spop %270 }
 0x305   :  { %213 = sst [smem:[#allocation6]] %s271_s0 }
 0x306   :  { %316 = shalt.err (!%p313_p10)
}
 0x307   :  { %s328_s13 = smov [#allocation6]  }
 0x308   :  { %221 = dma.smem_to_hbm %s328_s13, 16, %s397_s4, [#allocation5]  }
 0x309   :  { %319 = dma.done.wait [#allocation5], 16  }
 0x30a   :  { %320 = vsyncadd [#allocation5], 4294967280 }
 0x30b   :  { %225 = sfence }
 0x30c   :  { %226 = vsyncpa [#allocation4], 1 }
 0x30d   :  { %227 = vsyncpa [#allocation5], 1 }

</bundles_post_ra>
